<compile_context>
chip_gen: v7x
topology: tpu7x:2x2x1
jax: 0.10.0
libtpu: 0.0.40
codegen_flags: <defaults>
</compile_context>

<pallas_src>
import functools
import math

import jax
import jax.numpy as jnp
from jax import lax
from jax.experimental import pallas as pl
from jax.experimental.pallas import tpu as pltpu


# --------------------------------------------------------------------------
# Tiling / VMEM planning
# --------------------------------------------------------------------------
def _round_up(x: int, m: int) -> int:
    return ((x + m - 1) // m) * m


def _largest_aligned_divisor(n: int, target: int, align: int) -> int:
    """Largest divisor of n that is <= target and a multiple of align."""
    target = max(align, min(n, target))
    for c in range(target, align - 1, -1):
        if n % c == 0 and c % align == 0:
            return c
    return n


def _vmem_capacity() -> int:
    try:
        return int(pltpu.get_tpu_info().vmem_capacity_bytes)
    except Exception:
        return 64 << 20  # conservative fallback (v7x per-core physical VMEM)


def _plan_tiles(B, D, dtype, block_m, block_n):
    itemsize = jnp.dtype(dtype).itemsize
    row_align = 16 if itemsize <= 2 else 8     # packed-sublane alignment for bf16
    vmem_cap = _vmem_capacity()
    budget = vmem_cap // 2                     # working-set budget, leaves headroom

    tm_t = int(block_m) if block_m else 1024   # big row tile: t re-streamed B/TM times
    tn_t = int(block_n) if block_n else 256    # lane/MXU-aligned column tile
    tm_t = max(row_align, (tm_t // row_align) * row_align)
    tn_t = max(row_align, (tn_t // row_align) * row_align)

    if B <= tn_t:
        b_pad = _round_up(B, row_align)
        tn = b_pad                              # single (full) column tile
    else:
        tn = max(128, (tn_t // 128) * 128)      # keep the logits lane dim dense
        b_pad = _round_up(B, tn)
    tm = b_pad if b_pad <= tm_t else _largest_aligned_divisor(b_pad, tm_t, row_align)

    def usage(tm_, tn_):
        return (2 * (tm_ + tn_) * D * itemsize   # double-buffered v / t tiles
                + 2 * (tm_ + tn_) * 4            # rowpart / colpart output blocks
                + tm_ * 4                        # row-sum scratch
                + 3 * tm_ * tn_ * 4)             # f32 s / p temporaries + slack

    # Shrink tiles (halving stays a divisor of b_pad) until inside the budget.
    while usage(tm, tn) > budget and tm >= 2 * row_align and (tm // 2) % 8 == 0:
        tm //= 2
    while usage(tm, tn) > budget and tn >= 256 and (tn // 2) % 128 == 0:
        tn //= 2

    vmem_limit = max(32 << 20, int(usage(tm, tn) * 1.5) + (4 << 20))
    vmem_limit = min(vmem_limit, (vmem_cap // 8) * 7)
    return b_pad, tm, tn, vmem_limit


# --------------------------------------------------------------------------
# Prologue: row L2-normalization (with optional scale fold)
# --------------------------------------------------------------------------
def _normalize_kernel(x_ref, o_ref, *, scale: float):
    x = x_ref[...].astype(jnp.float32)
    ssq = jnp.sum(x * x, axis=-1, keepdims=True)
    inv = lax.rsqrt(jnp.maximum(ssq, 1e-24)) * scale     # (F.normalize eps=1e-12)^2
    o_ref[...] = (x * inv).astype(o_ref.dtype)


def _normalize_rows(x, scale, tb, vmem_limit):
    Bp, D = x.shape
    itemsize = jnp.dtype(x.dtype).itemsize
    return pl.pallas_call(
        functools.partial(_normalize_kernel, scale=scale),
        out_shape=jax.ShapeDtypeStruct((Bp, D), x.dtype),
        grid_spec=pltpu.PrefetchScalarGridSpec(
            num_scalar_prefetch=0,
            grid=(Bp // tb,),
            in_specs=[pl.BlockSpec((tb, D), lambda i: (i, 0))],
            out_specs=pl.BlockSpec((tb, D), lambda i: (i, 0)),
        ),
        compiler_params=pltpu.CompilerParams(
            dimension_semantics=("parallel",),
            vmem_limit_bytes=vmem_limit),
        cost_estimate=pl.CostEstimate(
            flops=3 * Bp * D, transcendentals=Bp,
            bytes_accessed=2 * Bp * D * itemsize),
    )(x)


# --------------------------------------------------------------------------
# Main kernel: tiled flash-softmax over the BxB logits matrix
# --------------------------------------------------------------------------
def _ntxent_kernel(v_ref, t_ref, rowpart_ref, colpart_ref, row_sum_ref,
                   *, inv_temp: float, tm: int, tn: int, n_pad: int):
    i = pl.program_id(0)
    j = pl.program_id(1)
    last_j = pl.num_programs(1) - 1

    # Logits tile, already scaled by 1/T (folded into v in the prologue).
    # Contract D of both operands -> native transposed MXU feed, f32 accumulate.
    s = lax.dot_general(v_ref[...], t_ref[...],
                        dimension_numbers=(((1,), (1,)), ((), ())),
                        preferred_element_type=jnp.float32)       # (tm, tn)

    # cosine <= 1  =>  s <= 1/T: constant shift keeps exponents in (0, ~1].
    # Single exp pass shared by the row and column softmaxes.
    p = jnp.exp(s - inv_temp)

    @pl.when(j == 0)
    def _():
        row_sum_ref[...] = jnp.zeros_like(row_sum_ref)
        rowpart_ref[...] = jnp.zeros_like(rowpart_ref)

    row_sum_ref[...] += jnp.sum(p, axis=1, keepdims=True)         # (tm, 1)

    # Per-row-tile partial column sums; summed over row tiles in the JAX
    # epilogue so the row grid axis can stay "parallel" (v7x megacore).
    colpart_ref[...] = jnp.sum(p, axis=0, keepdims=True)[None]    # (1, 1, tn)

    # Positive-pair (diagonal) logits live only in tiles whose global row and
    # column ranges overlap; take them from the same s tile as the denominator.
    row0 = i * tm
    col0 = j * tn

    @pl.when(jnp.logical_and(row0 < col0 + tn, col0 < row0 + tm))
    def _():
        rid = row0 + lax.broadcasted_iota(jnp.int32, (tm, tn), 0)
        cid = col0 + lax.broadcasted_iota(jnp.int32, (tm, tn), 1)
        diag = jnp.sum(jnp.where(rid == cid, s, 0.0), axis=1, keepdims=True)
        rowpart_ref[...] -= diag

    @pl.when(j == last_j)
    def _():
        rs = row_sum_ref[...]
        if n_pad:  # zero-padded t rows each contribute exactly exp(-1/T)
            rs = jnp.maximum(rs - jnp.float32(n_pad * math.exp(-inv_temp)), 1e-37)
        rowpart_ref[...] += 0.5 * (jnp.log(rs) + inv_temp)


# --------------------------------------------------------------------------
# Public wrapper
# --------------------------------------------------------------------------
def ntxent_loss(v: jax.Array, t: jax.Array, temperature: float = 0.07, *,
                block_m=None, block_n=None) -> jax.Array:
    """Symmetric InfoNCE loss between two (B, D) embedding batches."""
    assert v.shape == t.shape and v.ndim == 2, "v and t must both be (B, D)"
    if temperature < 0.01:
        # Constant-shift softmax uses exp(logit - 1/T); below T ~= 0.01 the most
        # dissimilar pairs underflow f32 and an all-dissimilar row could hit
        # log(0).  TODO(synk): per-row running max for extremely small T.
        raise ValueError("ntxent_loss requires temperature >= 0.01")

    B, D = v.shape
    inv_temp = 1.0 / float(temperature)
    b_pad, tm, tn, vmem_limit = _plan_tiles(B, D, v.dtype, block_m, block_n)
    n_pad = b_pad - B
    if n_pad:
        v = jnp.pad(v, ((0, n_pad), (0, 0)))
        t = jnp.pad(t, ((0, n_pad), (0, 0)))

    # Prologue: normalize each modality once (1/T folded into v) so the main
    # kernel never re-normalizes the re-streamed t tiles.
    tb = _largest_aligned_divisor(b_pad, 128, 8)
    vn = _normalize_rows(v, inv_temp, tb, vmem_limit)
    tn_rows = _normalize_rows(t, 1.0, tb, vmem_limit)

    n_i, n_j = b_pad // tm, b_pad // tn
    kernel = functools.partial(_ntxent_kernel, inv_temp=inv_temp,
                               tm=tm, tn=tn, n_pad=n_pad)

    itemsize = jnp.dtype(v.dtype).itemsize
    cost = pl.CostEstimate(
        flops=2 * b_pad * b_pad * D + 8 * b_pad * b_pad,
        transcendentals=b_pad * b_pad + 2 * b_pad,
        # t is re-streamed n_i times, v is read once, plus small f32 outputs.
        bytes_accessed=(n_i + 1) * b_pad * D * itemsize + (n_i + 1) * b_pad * 4,
    )

    rowpart, colpart = pl.pallas_call(
        kernel,
        out_shape=(jax.ShapeDtypeStruct((b_pad, 1), jnp.float32),
                   jax.ShapeDtypeStruct((n_i, 1, b_pad), jnp.float32)),
        grid_spec=pltpu.PrefetchScalarGridSpec(
            num_scalar_prefetch=0,
            grid=(n_i, n_j),
            in_specs=[
                pl.BlockSpec((tm, D), lambda i, j: (i, 0)),        # v row tile
                pl.BlockSpec((tn, D), lambda i, j: (j, 0)),        # t column tile
            ],
            out_specs=[
                pl.BlockSpec((tm, 1), lambda i, j: (i, 0)),        # 0.5*lse_row - diag
                pl.BlockSpec((1, 1, tn), lambda i, j: (i, 0, j)),  # partial col sums
            ],
            scratch_shapes=[pltpu.VMEM((tm, 1), jnp.float32)],     # row sum-exp
        ),
        compiler_params=pltpu.CompilerParams(
            dimension_semantics=("parallel", "arbitrary"),
            vmem_limit_bytes=vmem_limit),
        cost_estimate=cost,
    )(vn, tn_rows)

    # O(B) epilogue: finish column log-sum-exp across row tiles, remove the
    # (exactly known) contribution of zero-padded v rows, and average.
    col_sum = jnp.sum(colpart, axis=(0, 1))[:B]
    if n_pad:
        col_sum = jnp.maximum(col_sum - jnp.float32(n_pad * math.exp(-inv_temp)),
                              1e-37)
    lse_col = jnp.log(col_sum) + inv_temp
    per_row = rowpart[:B, 0] + 0.5 * lse_col
    return jnp.mean(per_row)


# --------------------------------------------------------------------------
# Demo / self-check
# --------------------------------------------------------------------------
def _reference(v, t, temperature, mxu_dtype):
    """Pure-JAX reference; mxu_dtype mimics the matmul feed precision."""
    v32 = v.astype(jnp.float32)
    t32 = t.astype(jnp.float32)
    vn = v32 / jnp.maximum(jnp.linalg.norm(v32, axis=-1, keepdims=True), 1e-12)
    tn = t32 / jnp.maximum(jnp.linalg.norm(t32, axis=-1, keepdims=True), 1e-12)
    a = (vn / temperature).astype(mxu_dtype)
    b = tn.astype(mxu_dtype)
    logits = jnp.dot(a, b.T, preferred_element_type=jnp.float32,
                     precision=jax.lax.Precision.HIGHEST)
    idx = jnp.arange(v.shape[0])
    diag = logits[idx, idx]
    lse_r = jax.nn.logsumexp(logits, axis=1)
    lse_c = jax.nn.logsumexp(logits, axis=0)
    return jnp.mean(0.5 * (lse_r + lse_c) - diag)


def _check(v, t, temperature, loss, tol):
    r_f32 = float(_reference(v, t, temperature, jnp.float32))
    r_bf16 = float(_reference(v, t, temperature, jnp.bfloat16))
    err = min(abs(float(loss) - r_f32), abs(float(loss) - r_bf16))
    assert err < tol, (float(loss), r_f32, r_bf16, err)


if __name__ == "__main__":
    key = jax.random.PRNGKey(0)
    temperature = 0.07
    configs = [
        # (B, D, dtype, block_m, block_n)
        (16, 128, jnp.float32, None, None),   # single tile, default tiling
        (256, 128, jnp.float32, 128, 128),    # 2x2 grid, diagonal crosses tiles
        (200, 64, jnp.float32, 64, 128),      # padding path (B -> 256), tm != tn
        (16, 128, jnp.bfloat16, None, None),  # bf16 inputs (16-row alignment)
    ]
    for (B, D, dtype, bm, bn) in configs:
        kv, kt, key = jax.random.split(key, 3)
        v = jax.random.normal(kv, (B, D), dtype=jnp.float32).astype(dtype)
        t = jax.random.normal(kt, (B, D), dtype=jnp.float32).astype(dtype)
        loss = ntxent_loss(v, t, temperature, block_m=bm, block_n=bn)
        jax.block_until_ready(loss)
        _check(v, t, temperature, loss,
               tol=2e-2 if dtype == jnp.bfloat16 else 1e-2)
    print("KERNEL_OK")
</pallas_src>

<mosaic_0001>
module attributes {stable_mosaic.version = 11 : i64} {
  func.func @_normalize_kernel(%arg0: i32, %arg1: memref<16x128xf32, #tpu.memory_space<vmem>>, %arg2: memref<16x128xf32, #tpu.memory_space<vmem>>) attributes {dimension_semantics = [#tpu.dimension_semantics<parallel>], iteration_bounds = array<i64: 1>, scalar_prefetch = 0 : i64, scratch_operands = 0 : i64, tpu.core_type = #tpu.core_type<tc>, window_params = [{transform_indices = @transform_0, window_bounds = array<i64: 16, 128>}, {transform_indices = @transform_1, window_bounds = array<i64: 16, 128>}]} {
    %c0 = arith.constant 0 : index
    %c0_0 = arith.constant 0 : index
    %0 = vector.load %arg1[%c0, %c0_0] : memref<16x128xf32, #tpu.memory_space<vmem>>, vector<16x128xf32>
    %1 = arith.mulf %0, %0 : vector<16x128xf32>
    %cst = arith.constant dense<0.000000e+00> : vector<16xf32>
    %2 = vector.multi_reduction <add>, %1, %cst [1] : vector<16x128xf32> to vector<16xf32>
    %3 = vector.shape_cast %2 : vector<16xf32> to vector<16x1xf32>
    %cst_1 = arith.constant 1.000000e-24 : f32
    %4 = vector.broadcast %cst_1 : f32 to vector<16x1xf32>
    %5 = arith.maximumf %3, %4 : vector<16x1xf32>
    %6 = math.rsqrt %5 : vector<16x1xf32>
    %cst_2 = arith.constant 14.2857141 : f32
    %7 = vector.broadcast %cst_2 : f32 to vector<16x1xf32>
    %8 = arith.mulf %6, %7 : vector<16x1xf32>
    %9 = vector.broadcast %8 : vector<16x1xf32> to vector<16x128xf32>
    %10 = arith.mulf %0, %9 : vector<16x128xf32>
    %c0_3 = arith.constant 0 : index
    %c0_4 = arith.constant 0 : index
    %11 = vector.load %arg2[%c0_3, %c0_4] : memref<16x128xf32, #tpu.memory_space<vmem>>, vector<16x128xf32>
    tpu.vector_store %arg2[%c0_3, %c0_4], %10 {strides = array<i32>} : memref<16x128xf32, #tpu.memory_space<vmem>>, vector<16x128xf32>,
    return
  }
  func.func @transform_0(%arg0: i32) -> (i32, i32) {
    %c0_i32 = arith.constant 0 : i32
    %c0_i32_0 = arith.constant 0 : i32
    return %arg0, %c0_i32 : i32, i32
  }
  func.func @transform_1(%arg0: i32) -> (i32, i32) {
    %c0_i32 = arith.constant 0 : i32
    %c0_i32_0 = arith.constant 0 : i32
    return %arg0, %c0_i32 : i32, i32
  }
}

</mosaic_0001>

<bundles_post_ra>
// kernel: tpu_custom_call.1
= control target key start
LH: loop header
LB: loop body
LE: loop exit
PB: predicated region body
PF: predicated region fallthrough
CT: control target
= control target key end

     0   :  { %6 = vsyncpa [#allocation3], 0  ;;  %s158_s0 = inlined_call_operand.hbm [shape: f32[16,128], index: 0, kind: input, shape index: {}]   ;;  %s159_s1 = inlined_call_operand.hbm [shape: f32[16,128], index: 1, kind: output, shape index: {}]  }
   0x1   :  { %7 = vsyncpa [#allocation4], 0  ;;  %s114_s6 = smov [#allocation2]   ;;  %s66_s10 = scalar_lea.hbm %s158_s0, 256 }
   0x2   :  { %s13_s7 = sshll.u32 %s114_s6, 4  ;;  %p67_p0 = scmp.ne.s32.totalorder %s158_s0, %s66_s10  ;;  %s14_s7 = int_to_ptr.vmem [resolvable:$true] %s13_s7 }
   0x3   :  { %p70_p1 = scmp.lt.u32.totalorder %s66_s10, %s158_s0 }
   0x5   :  { %p72_p2 = pnand %p70_p1, %p67_p0 }
   0x7   :  { %75 = shalt.err (!%p72_p2)
}
   0x8   :  { %s76_s15 = scalar_lea.vmem %s14_s7, 256  ;;  %p81_p4 = scmp.lt.s32.totalorder %s14_s7, %s14_s7 }
   0x9   :  { %p77_p3 = scmp.ne.s32.totalorder %s14_s7, %s76_s15  ;;  %p82_p5 = scmp.lt.s32.totalorder %s76_s15, %s76_s15 }
   0xb   :  { %p83_p6 = por %p82_p5, %p81_p4 }
   0xd   :  { %p84_p7 = pnand %p83_p6, %p77_p3 }
   0xf   :  { %87 = shalt.err (!%p84_p7)
}
  0x10   :  { %s115_s16 = smov 128   ;;  %s116_s17 = smov 8  }
  0x11   :  { %19 = dma.hbm_to_vmem [thread:$0]  %s158_s0, 256, %s14_s7, [#allocation3], %s115_s16, %s115_s16, %s116_s17  }
  0x12   :  { %110 = dma.done.wait [#allocation3], 256  }
  0x13   :  { %111 = vsyncadd [#allocation3], 4294967040  ;;  %v23_v0 = vld [vmem:[#allocation2] sm:$0xff]  ;;  %v24_v1 = vld [vmem:[#allocation2 + $0x8] sm:$0xff]  ;;  %s117_s20 = smov [#allocation5]  }
  0x14   :  { %v25_v2 = vmul.f32 %v23_v0, %v23_v0  ;;  %v26_v3 = vmul.f32 %v24_v1, %v24_v1  ;;  %s46_s0 = sshll.u32 %s117_s20, 4  ;;  %s47_s0 = int_to_ptr.vmem [resolvable:$true] %s46_s0 }
  0x15   :  { %s88_s21 = scalar_lea.vmem %s47_s0, 256  ;;  %p93_p9 = scmp.lt.s32.totalorder %s47_s0, %s47_s0 }
  0x16   :  { %27 = vadd.xlane.f32.xlu0 %v25_v2  ;;  %p89_p8 = scmp.ne.s32.totalorder %s47_s0, %s88_s21  ;;  %p94_p10 = scmp.lt.s32.totalorder %s88_s21, %s88_s21 }
  0x18   :  { %p95_p11 = por %p94_p10, %p93_p9 }
  0x1a   :  { %29 = vadd.xlane.f32.xlu0 %v26_v3  ;;  %p96_p12 = pnand %p95_p11, %p89_p8 }
  0xa3   :  { %v28_v4 = vpop.xlane.xlu0 %27 }
  0xa4   :  { %v31_v5 = vmax.f32 %v28_v4, 1e-24 }
  0xa6   :  { %62 = vrsqrt.f32 %v31_v5 }
  0xa7   :  { %v30_v6 = vpop.xlane.xlu0 %29 }
  0xa8   :  { %v32_v7 = vmax.f32 %v30_v6, 1e-24 }
  0xaa   :  { %64 = vrsqrt.f32 %v32_v7 }
  0xb0   :  { %v63_v8 = vpop.eup %62 }
  0xb1   :  { %v35_v9 = vmul.f32 14.285714, %v63_v8 }
  0xb3   :  { %v37_v10 = vmul.f32 %v35_v9, %v23_v0 }
  0xb4   :  { %v65_v11 = vpop.eup %64 }
  0xb5   :  { %v36_v12 = vmul.f32 14.285714, %v65_v11  ;;  %39 = vst [vmem:[#allocation5] sm:$0xff] %v37_v10 }
  0xb7   :  { %v38_v13 = vmul.f32 %v36_v12, %v24_v1 }
  0xb9   :  { %40 = vst [vmem:[#allocation5 + $0x8] sm:$0xff] %v38_v13 }
  0xba   :  { %99 = shalt.err (!%p96_p12)
}
  0xbb   :  { %s100_s24 = scalar_lea.hbm %s159_s1, 256 }
  0xbc   :  { %p101_p13 = scmp.ne.s32.totalorder %s159_s1, %s100_s24  ;;  %p104_p0 = scmp.lt.u32.totalorder %s100_s24, %s159_s1 }
  0xbe   :  { %p106_p1 = pnand %p104_p0, %p101_p13 }
  0xc0   :  { %109 = shalt.err (!%p106_p1)
}
  0xc1   :  { %52 = dma.vmem_to_hbm [thread:$0]  %s47_s0, 256, %s159_s1, [#allocation4], %s115_s16, %s115_s16, %s116_s17  }
  0xc2   :  { %112 = dma.done.wait [#allocation4], 256  }
  0xc3   :  { %113 = vsyncadd [#allocation4], 4294967040 }
  0xc4   :  { %56 = vsyncpa [#allocation3], 1 }
  0xc5   :  { %57 = vsyncpa [#allocation4], 1 }

</bundles_post_ra>
